<compile_context>
chip_gen: v5e
topology: v5e:2x2
jax: 0.10.0
libtpu: 0.0.40
codegen_flags: <defaults>
</compile_context>

<pallas_src>
import math

import jax
import jax.numpy as jnp
from jax.experimental import pallas as pl
from jax.experimental.pallas import tpu as pltpu


def _final_layer_kernel(x_ref, shift_ref, scale_ref, wo_ref, bo_ref, out_ref):
    # x_ref:     (tT, H)       input dtype (f32 or bf16)
    # shift_ref: (1, H)        f32   adaLN shift for this batch element
    # scale_ref: (1, H)        f32   adaLN scale for this batch element
    # wo_ref:    (H, OUT_PAD)  bf16  final linear weight (lane-dense padded)
    # bo_ref:    (1, OUT_PAD)  f32   final linear bias   (lane-dense padded)
    # out_ref:   (tT, OUT_PAD)
    x = x_ref[...].astype(jnp.float32)

    # LayerNorm (elementwise_affine=False, eps=1e-6) in f32.
    mean = jnp.mean(x, axis=-1, keepdims=True)
    xc = x - mean
    var = jnp.mean(xc * xc, axis=-1, keepdims=True)
    x_norm = xc * jax.lax.rsqrt(var + 1e-6)

    # modulate: x * (1 + scale) + shift, broadcast over the token tile.
    x_mod = x_norm * (1.0 + scale_ref[...]) + shift_ref[...]

    # Final linear: bf16 MXU operands, f32 accumulation, f32 bias,
    # lane-dense (128-multiple) output columns.
    out = jnp.dot(x_mod.astype(jnp.bfloat16), wo_ref[...],
                  preferred_element_type=jnp.float32) + bo_ref[...]
    out_ref[...] = out.astype(out_ref.dtype)


def _pick_token_tile(T):
    """Largest 'nice' token tile that divides T (keeps VMEM bounded on v7x)."""
    for cand in (512, 256, 128, 64, 32, 16, 8):
        if T % cand == 0:
            return cand
    return T


def pack_final_layer_params(params):
    """One-time packing of the final-linear weights (bf16 cast + lane pad).

    params:
      w_ada (H, 2H), b_ada (2H,)  -- adaLN_modulation Linear (in, out layout)
      w_lin (H, D),  b_lin (D,)   -- final Linear, D = patch**2 * out_channels
    """
    w_lin, b_lin = params["w_lin"], params["b_lin"]
    out_dim = w_lin.shape[1]
    out_pad = pl.cdiv(out_dim, 128) * 128  # keep at 128-multiple; kernel is
    pad = out_pad - out_dim                # mem-bound, wider pad only adds bytes
    return {
        "w_ada": params["w_ada"].astype(jnp.float32),
        "b_ada": params["b_ada"].astype(jnp.float32),
        "w_out": jnp.pad(w_lin, ((0, 0), (0, pad))).astype(jnp.bfloat16),
        "b_out": jnp.pad(b_lin, (0, pad)).reshape(1, out_pad).astype(jnp.float32),
        "out_dim": out_dim,
        "out_pad": out_pad,
    }


def final_layer_forward(x, c, packed):
    """FinalLayer forward.

    x: (N, T, H) tokens (f32 or bf16).
    c: (N, H)    conditioning.
    packed: output of pack_final_layer_params().
    """
    N, T, H = x.shape
    out_dim, out_pad = packed["out_dim"], packed["out_pad"]
    w_out, b_out = packed["w_out"], packed["b_out"]

    # adaLN modulation hoisted out of the kernel: one tiny f32 matmul for all
    # N at once (negligible compute, would waste >99% of MXU rows in-kernel).
    ada = jax.nn.silu(c.astype(jnp.float32)) @ packed["w_ada"] + packed["b_ada"]
    shift = ada[:, :H].reshape(N, 1, H)
    scale = ada[:, H:].reshape(N, 1, H)

    tT = _pick_token_tile(T)
    grid = (N, T // tT)

    # VMEM budget: double-buffered x + out tiles, resident weights, margin.
    x_bytes = jnp.dtype(x.dtype).itemsize
    est = (2 * tT * H * x_bytes          # x tiles (double buffered)
           + 2 * tT * out_pad * 4        # out tiles
           + 2 * H * out_pad * 2         # resident w_out (+ pipeline copy)
           + 4 * H * 4 + out_pad * 4)    # shift/scale/bias
    vmem_limit = int(min(max(2 * est, 32 * 1024 * 1024), 64 * 1024 * 1024))

    resident2d = lambda b, t: (0, 0)  # weights/biases stay resident

    out_padded = pl.pallas_call(
        _final_layer_kernel,
        out_shape=jax.ShapeDtypeStruct((N, T, out_pad), jnp.float32),
        grid=grid,
        in_specs=[
            pl.BlockSpec((None, tT, H), lambda b, t: (b, t, 0)),   # x
            pl.BlockSpec((None, 1, H), lambda b, t: (b, 0, 0)),    # shift
            pl.BlockSpec((None, 1, H), lambda b, t: (b, 0, 0)),    # scale
            pl.BlockSpec((H, out_pad), resident2d),                # w_out
            pl.BlockSpec((1, out_pad), resident2d),                # b_out
        ],
        out_specs=pl.BlockSpec((None, tT, out_pad), lambda b, t: (b, t, 0)),
        compiler_params=pltpu.CompilerParams(
            dimension_semantics=("parallel", "parallel"),
            vmem_limit_bytes=vmem_limit),
    )(x, shift, scale, w_out, b_out)

    # TODO(synk): if the consumer (unpatchify) can take the padded/bf16 layout,
    # return out_padded directly to avoid this extra HBM slice pass.
    return out_padded[:, :, :out_dim]


def _reference_forward(x, c, params):
    """Plain-JAX f32 reference mirroring the PyTorch module."""
    w_ada, b_ada = params["w_ada"], params["b_ada"]
    w_lin, b_lin = params["w_lin"], params["b_lin"]
    H = x.shape[-1]

    ada = jax.nn.silu(c) @ w_ada + b_ada
    shift, scale = ada[:, :H], ada[:, H:]

    mean = x.mean(axis=-1, keepdims=True)
    var = ((x - mean) ** 2).mean(axis=-1, keepdims=True)
    x_norm = (x - mean) / jnp.sqrt(var + 1e-6)

    x_mod = x_norm * (1.0 + scale[:, None, :]) + shift[:, None, :]
    return x_mod @ w_lin + b_lin


if __name__ == "__main__":
    N, T = 2, 8
    hidden_size = 32
    patch_size = 2
    out_channels = 4
    out_dim = patch_size * patch_size * out_channels

    key = jax.random.PRNGKey(0)
    kx, kc, kwa, kba, kwl, kbl = jax.random.split(key, 6)

    params = {
        "w_ada": jax.random.normal(
            kwa, (hidden_size, 2 * hidden_size), jnp.float32
        ) * (1.0 / math.sqrt(hidden_size)),
        "b_ada": jax.random.normal(kba, (2 * hidden_size,), jnp.float32) * 0.01,
        "w_lin": jax.random.normal(
            kwl, (hidden_size, out_dim), jnp.float32
        ) * (1.0 / math.sqrt(hidden_size)),
        "b_lin": jax.random.normal(kbl, (out_dim,), jnp.float32) * 0.01,
    }

    x = jax.random.normal(kx, (N, T, hidden_size), jnp.float32)
    c = jax.random.normal(kc, (N, hidden_size), jnp.float32)

    packed = pack_final_layer_params(params)  # one-time weight packing
    out = final_layer_forward(x, c, packed)
    out = jax.block_until_ready(out)

    ref = _reference_forward(x, c, params)
    assert out.shape == (N, T, out_dim)
    # Only the final matmul uses bf16 MXU operands (f32 accumulation);
    # LayerNorm / modulate / adaLN stay in f32.
    assert jnp.allclose(out, ref, atol=3e-2, rtol=3e-2), float(
        jnp.max(jnp.abs(out - ref)))

    print("KERNEL_OK")
</pallas_src>

<mosaic_0001>
module attributes {stable_mosaic.version = 11 : i64} {
  func.func @_final_layer_kernel(%arg0: i32, %arg1: i32, %arg2: memref<1x8x32xf32, #tpu.memory_space<vmem>>, %arg3: memref<1x1x32xf32, #tpu.memory_space<vmem>>, %arg4: memref<1x1x32xf32, #tpu.memory_space<vmem>>, %arg5: memref<32x128xbf16, #tpu.memory_space<vmem>>, %arg6: memref<1x128xf32, #tpu.memory_space<vmem>>, %arg7: memref<1x8x128xf32, #tpu.memory_space<vmem>>) attributes {dimension_semantics = [#tpu.dimension_semantics<parallel>, #tpu.dimension_semantics<parallel>], iteration_bounds = array<i64: 2, 1>, scalar_prefetch = 0 : i64, scratch_operands = 0 : i64, tpu.core_type = #tpu.core_type<tc>, window_params = [{transform_indices = @transform_0, window_bounds = array<i64: 1, 8, 32>}, {transform_indices = @transform_1, window_bounds = array<i64: 1, 1, 32>}, {transform_indices = @transform_2, window_bounds = array<i64: 1, 1, 32>}, {pipeline_mode = #tpu.pipeline_mode<synchronous>, transform_indices = @transform_3, window_bounds = array<i64: 32, 128>}, {pipeline_mode = #tpu.pipeline_mode<synchronous>, transform_indices = @transform_4, window_bounds = array<i64: 1, 128>}, {transform_indices = @transform_5, window_bounds = array<i64: 1, 8, 128>}]} {
    %c0 = arith.constant 0 : index
    %c0_0 = arith.constant 0 : index
    %c0_1 = arith.constant 0 : index
    %0 = vector.load %arg2[%c0, %c0_0, %c0_1] : memref<1x8x32xf32, #tpu.memory_space<vmem>>, vector<1x8x32xf32>
    %1 = vector.shape_cast %0 : vector<1x8x32xf32> to vector<8x32xf32>
    %cst = arith.constant dense<0.000000e+00> : vector<8xf32>
    %2 = vector.multi_reduction <add>, %1, %cst [1] : vector<8x32xf32> to vector<8xf32>
    %3 = vector.shape_cast %2 : vector<8xf32> to vector<8x1xf32>
    %cst_2 = arith.constant 3.200000e+01 : f32
    %4 = vector.broadcast %cst_2 : f32 to vector<8x1xf32>
    %5 = arith.divf %3, %4 : vector<8x1xf32>
    %6 = vector.broadcast %5 : vector<8x1xf32> to vector<8x32xf32>
    %7 = arith.subf %1, %6 : vector<8x32xf32>
    %8 = arith.mulf %7, %7 : vector<8x32xf32>
    %cst_3 = arith.constant dense<0.000000e+00> : vector<8xf32>
    %9 = vector.multi_reduction <add>, %8, %cst_3 [1] : vector<8x32xf32> to vector<8xf32>
    %10 = vector.shape_cast %9 : vector<8xf32> to vector<8x1xf32>
    %cst_4 = arith.constant 3.200000e+01 : f32
    %11 = vector.broadcast %cst_4 : f32 to vector<8x1xf32>
    %12 = arith.divf %10, %11 : vector<8x1xf32>
    %cst_5 = arith.constant 9.99999997E-7 : f32
    %13 = vector.broadcast %cst_5 : f32 to vector<8x1xf32>
    %14 = arith.addf %12, %13 : vector<8x1xf32>
    %15 = math.rsqrt %14 : vector<8x1xf32>
    %16 = vector.broadcast %15 : vector<8x1xf32> to vector<8x32xf32>
    %17 = arith.mulf %7, %16 : vector<8x32xf32>
    %c0_6 = arith.constant 0 : index
    %c0_7 = arith.constant 0 : index
    %c0_8 = arith.constant 0 : index
    %18 = vector.load %arg4[%c0_6, %c0_7, %c0_8] : memref<1x1x32xf32, #tpu.memory_space<vmem>>, vector<1x1x32xf32>
    %19 = vector.shape_cast %18 : vector<1x1x32xf32> to vector<1x32xf32>
    %cst_9 = arith.constant 1.000000e+00 : f32
    %20 = vector.broadcast %cst_9 : f32 to vector<1x32xf32>
    %21 = arith.addf %20, %19 : vector<1x32xf32>
    %22 = vector.broadcast %21 : vector<1x32xf32> to vector<8x32xf32>
    %23 = arith.mulf %17, %22 : vector<8x32xf32>
    %c0_10 = arith.constant 0 : index
    %c0_11 = arith.constant 0 : index
    %c0_12 = arith.constant 0 : index
    %24 = vector.load %arg3[%c0_10, %c0_11, %c0_12] : memref<1x1x32xf32, #tpu.memory_space<vmem>>, vector<1x1x32xf32>
    %25 = vector.shape_cast %24 : vector<1x1x32xf32> to vector<1x32xf32>
    %26 = vector.broadcast %25 : vector<1x32xf32> to vector<8x32xf32>
    %27 = arith.addf %23, %26 : vector<8x32xf32>
    %28 = arith.truncf %27 : vector<8x32xf32> to vector<8x32xbf16>
    %c0_13 = arith.constant 0 : index
    %c0_14 = arith.constant 0 : index
    %29 = vector.load %arg5[%c0_13, %c0_14] : memref<32x128xbf16, #tpu.memory_space<vmem>>, vector<32x128xbf16>
    %cst_15 = arith.constant dense<0.000000e+00> : vector<8x128xf32>
    %30 = tpu.matmul %28, %29, %cst_15 {dimension_numbers = #tpu.dot_dimension_numbers<[1], [0], [0], [1], [0, 0, 1, 1], [], []>} : vector<8x32xbf16>, vector<32x128xbf16>, vector<8x128xf32> -> vector<8x128xf32>
    %c0_16 = arith.constant 0 : index
    %c0_17 = arith.constant 0 : index
    %31 = vector.load %arg6[%c0_16, %c0_17] : memref<1x128xf32, #tpu.memory_space<vmem>>, vector<1x128xf32>
    %32 = vector.broadcast %31 : vector<1x128xf32> to vector<8x128xf32>
    %33 = arith.addf %30, %32 : vector<8x128xf32>
    %c0_18 = arith.constant 0 : index
    %c0_19 = arith.constant 0 : index
    %c0_20 = arith.constant 0 : index
    %34 = vector.load %arg7[%c0_18, %c0_19, %c0_20] : memref<1x8x128xf32, #tpu.memory_space<vmem>>, vector<1x8x128xf32>
    %35 = vector.shape_cast %34 : vector<1x8x128xf32> to vector<8x128xf32>
    %36 = vector.shape_cast %33 : vector<8x128xf32> to vector<1x8x128xf32>
    tpu.vector_store %arg7[%c0_18, %c0_19, %c0_20], %36 {strides = array<i32>} : memref<1x8x128xf32, #tpu.memory_space<vmem>>, vector<1x8x128xf32>,
    return
  }
  func.func @transform_0(%arg0: i32, %arg1: i32) -> (i32, i32, i32) {
    %c0_i32 = arith.constant 0 : i32
    %c0_i32_0 = arith.constant 0 : i32
    return %arg0, %arg1, %c0_i32 : i32, i32, i32
  }
  func.func @transform_1(%arg0: i32, %arg1: i32) -> (i32, i32, i32) {
    %c0_i32 = arith.constant 0 : i32
    %c0_i32_0 = arith.constant 0 : i32
    %c0_i32_1 = arith.constant 0 : i32
    return %arg0, %c0_i32, %c0_i32_0 : i32, i32, i32
  }
  func.func @transform_2(%arg0: i32, %arg1: i32) -> (i32, i32, i32) {
    %c0_i32 = arith.constant 0 : i32
    %c0_i32_0 = arith.constant 0 : i32
    %c0_i32_1 = arith.constant 0 : i32
    return %arg0, %c0_i32, %c0_i32_0 : i32, i32, i32
  }
  func.func @transform_3(%arg0: i32, %arg1: i32) -> (i32, i32) {
    %c0_i32 = arith.constant 0 : i32
    %c0_i32_0 = arith.constant 0 : i32
    %c0_i32_1 = arith.constant 0 : i32
    return %c0_i32, %c0_i32_0 : i32, i32
  }
  func.func @transform_4(%arg0: i32, %arg1: i32) -> (i32, i32) {
    %c0_i32 = arith.constant 0 : i32
    %c0_i32_0 = arith.constant 0 : i32
    %c0_i32_1 = arith.constant 0 : i32
    return %c0_i32, %c0_i32_0 : i32, i32
  }
  func.func @transform_5(%arg0: i32, %arg1: i32) -> (i32, i32, i32) {
    %c0_i32 = arith.constant 0 : i32
    %c0_i32_0 = arith.constant 0 : i32
    return %arg0, %arg1, %c0_i32 : i32, i32, i32
  }
}

</mosaic_0001>

<bundles_post_ra>
// kernel: tpu_custom_call.1
= control target key start
LH: loop header
LB: loop body
LE: loop exit
PB: predicated region body
PF: predicated region fallthrough
CT: control target
= control target key end

     0   :  { %s1123_s0 = inlined_call_operand.hbm [shape: f32[2,8,32], index: 0, kind: input, shape index: {}]   ;;  %s1124_s1 = inlined_call_operand.hbm [shape: f32[2,1,32], index: 1, kind: input, shape index: {}]   ;;  %s1125_s2 = inlined_call_operand.hbm [shape: f32[2,1,32], index: 2, kind: input, shape index: {}]   ;;  %s1126_s3 = inlined_call_operand.hbm [shape: bf16[32,128], index: 3, kind: input, shape index: {}]   ;;  %s1127_s4 = inlined_call_operand.vmem [shape: f32[1,128], index: 4, kind: input, shape index: {}]   ;;  %s1128_s5 = inlined_call_operand.hbm [shape: f32[2,8,128], index: 5, kind: output, shape index: {}]  }
   0x1   :  { %1137 = sst [smem:[#allocation22_spill]] %s1124_s1 }
   0x2   :  { %1138 = sst [smem:[#allocation23_spill]] %s1126_s3 }
   0x3   :  { %1139 = sst [smem:[#allocation24_spill]] %s1127_s4 }
   0x4   :  { %10 = vsyncpa [#allocation3], 0 }
   0x5   :  { %12 = vsyncpa [#allocation3 + $0x1], 0 }
   0x6   :  { %13 = vsyncpa [#allocation6], 0 }
   0x7   :  { %15 = vsyncpa [#allocation6 + $0x1], 0 }
   0x8   :  { %16 = vsyncpa [#allocation9], 0 }
   0x9   :  { %17 = vsyncpa [#allocation4], 0 }
   0xa   :  { %19 = vsyncpa [#allocation4 + $0x1], 0  ;;  %s930_s18 = smov 0   ;;  %s932_s19 = smov 0  }
   0xb   :  { %s934_s20 = smov 0   ;;  %s936_s21 = smov 0  }
   0xc   :  { %s938_s22 = smov 0   ;;  %s940_s23 = smov 0  }
   0xd LB: > { %1140 = sst [smem:[#allocation15_spill]] %s874_s18  ;;  %s961_s24 = sadd.s32 4294967295, %s894_s23   ;;  %s894_s23 = sphi %s940_s23, %s25_s23   ;;  %s890_s22 = sphi %s938_s22, %s1165_s22   ;;  %s886_s21 = sphi %s936_s21, %s1164_s21   ;;  %s882_s20 = sphi %s934_s20, %s1160_s20   ;;  %s878_s19 = sphi %s932_s19, %s1163_s19   ;;  %s874_s18 = sphi %s930_s18, %s1162_s18  }
   0xe   : > { %1141 = sst [smem:[#allocation16_spill]] %s882_s20  ;;  %s567_s25 = sadd.s32 4294967294, %s894_s23  }
   0xf   : > { %1142 = sst [smem:[#allocation17_spill]] %s894_s23  ;;  %s37_s26 = sadd.s32 1, %s890_s22 }
  0x10   : > { %s46_s27 = sadd.s32 1, %s882_s20  ;;  %p39_p0 = scmp.ge.s32.totalorder %s37_s26, 2 }
  0x11   : > { %p53_p1 = scmp.ne.s32.totalorder %s882_s20, %s878_s19  ;;  %p54_p2 = scmp.eq.s32.totalorder %s894_s23, 0 }
  0x12   : > { %p59_p3 = scmp.ne.s32.totalorder %s878_s19, %s874_s18  ;;  %s1167_s26 = smov (%p39_p0, %s37_s26), 0 }
  0x13   : > { %1143 = sst [smem:[#allocation18_spill]] %s1167_s26  ;;  %p55_p4 = por %p54_p2, %p53_p1 }
  0x14   : > { %p179_p5 = scmp.eq.s32.totalorder %s961_s24, 1  ;;  %s41_s28 = ssub.s32 %s890_s22, %s1167_s26 }
  0x15   : > { %p185_p6 = scmp.eq.s32.totalorder %s567_s25, 1  ;;  %p44_p7 = scmp.eq.s32.totalorder %s41_s28, 0 }
  0x16   : > { %p976_p8 = por %p179_p5, %p53_p1  ;;  %p570_p10 = scmp.ge.s32.totalorder %s894_s23, 2 }
  0x17   : > { %p983_p9 = por %p185_p6, %p59_p3  ;;  %p623_p11 = scmp.lt.s32.totalorder %s894_s23, 2 }
  0x18   : > { %s1144_s29 = scalar_select %p976_p8, 1, 0 }
  0x19   : > { %s1146_s30 = scalar_select %p983_p9, 1, 0 }
  0x1a   : > { %1145 = sst [smem:[#allocation19_spill]] %s1144_s29  ;;  %s993_s7 = sand.u32 1, %s882_s20  }
  0x1b   : > { %1147 = sst [smem:[#allocation20_spill]] %s1146_s30  ;;  %s242_s8 = sand.u32 1, %s894_s23  }
  0x1c   : > { %s988_s6 = scalar_select %p44_p7, %s882_s20, %s46_s27  }
  0x1d   : > { %p996_p12 = pnand %p623_p11, %p55_p4  ;;  %s1150_s1 = sld [smem:[#allocation22_spill]] }
  0x1e   : > { %1148 = sst [smem:[#allocation21_spill]] %s988_s6  ;;  %s245_s14 = scalar_lea.vmem [#allocation5], %s993_s7 }
  0x1f   : > { %s252_s15 = sshll.u32 %s245_s14, 4  ;;  %s1005_s16 = scalar_lea.sflag [#allocation6], %s242_s8  ;;  %s253_s15 = int_to_ptr.vmem [resolvable:$true] %s252_s15 }
  0x20   : > { %p60_p13 = scmp.eq.s32.totalorder %s961_s24, 0  ;;  %p568_p0 = scmp.ge.s32.totalorder %s894_s23, 1 }
  0x21   : > { %p192_p1 = scmp.lt.s32.totalorder %s894_s23, 3  ;;  %s1152_s3 = sld [smem:[#allocation23_spill]] }
  0x22   : > { %p1018_p2 = por %p60_p13, %p59_p3  ;;  %s896_s8 = smov [#allocation8]  }
  0x23   : > { %s248_s12 = scalar_lea.hbm %s1150_s1, %s890_s22  ;;  %p1025_p4 = pnand %p568_p0, %p192_p1 }
  0x24   : > { %s250_s13 = sshll.u32 %s248_s12, 4  ;;  %s205_s11 = sshll.u32 %s896_s8, 4  ;;  %s251_s13 = int_to_ptr.hbm [resolvable:$true] %s250_s13  ;;  %s206_s11 = int_to_ptr.vmem [resolvable:$true] %s205_s11 }
  0x25   : > { %614 = dma.hbm_to_vmem [thread:$0]  (!%p996_p12), %s251_s13, 16, %s253_s15, %s1005_s16  }
  0x26   : > { %p604_p5 = pneg %p1025_p4  ;;  %s571_s12 = sshll.u32 %s993_s7, 3 }
  0x27   : > { %s203_s28 = sshll.u32 %s1152_s3, 4  ;;  %s572_s13 = sshll.u32 %s890_s22, 3  ;;  %s204_s28 = int_to_ptr.hbm [resolvable:$true] %s203_s28 }
  0x28   : > { %p605_p3 = pnand %p604_p5, %p60_p13  ;;  %s897_s14 = smov 64  }
  0x29   : > { %s898_s15 = smov 4   ;;  %s231_s1 = scalar_lea.hbm %s1123_s0, %s572_s13 }
  0x2a   : > { %607 = dma.hbm_to_vmem [thread:$0]  (!%p605_p3), %s204_s28, 256, %s206_s11, [#allocation9], %s897_s14, %s897_s14, %s898_s15  }
  0x2b   : > { %s226_s3 = scalar_lea.vmem [#allocation2], %s571_s12  ;;  %s233_s6 = sshll.u32 %s231_s1, 4  ;;  %s234_s6 = int_to_ptr.hbm [resolvable:$true] %s233_s6 }
  0x2c   : > { %s235_s26 = sshll.u32 %s226_s3, 4  ;;  %s223_s8 = scalar_lea.sflag [#allocation3], %s993_s7  ;;  %s236_s26 = int_to_ptr.vmem [resolvable:$true] %s235_s26 }
  0x2d   : > { %611 = dma.hbm_to_vmem [thread:$0]  (!%p996_p12), %s234_s6, 128, %s236_s26, %s223_s8  }
  0x2e   : > { %s265_s30 = scalar_lea.hbm %s1125_s2, %s890_s22  ;;  %s262_s18 = scalar_lea.vmem [#allocation7], %s993_s7 }
  0x2f   : > { %s269_s4 = sshll.u32 %s262_s18, 4  ;;  %s267_s29 = sshll.u32 %s265_s30, 4  ;;  %s270_s4 = int_to_ptr.vmem [resolvable:$true] %s269_s4  ;;  %s268_s29 = int_to_ptr.hbm [resolvable:$true] %s267_s29 }
  0x30   : > { %617 = dma.hbm_to_vmem [thread:$0]  (!%p996_p12), %s268_s29, 16, %s270_s4, %s1005_s16  }
  0x31   : > { %278 = sbr.rel (%p1025_p4) target bundleno = 465 (0x1d1), region = 40  ;;  %s1052_s1 = sand.u32 (!%p1025_p4), 1, %s878_s19  }
  0x32   : > { %s574_s3 = sshll.u32 (!%p1025_p4), %s1052_s1, 3  ;;  %s281_s20 = scalar_lea.sflag (!%p1025_p4), [#allocation3], %s1052_s1 }
  0x33   : > { %s284_s23 = scalar_lea.vmem (!%p1025_p4), [#allocation2], %s574_s3 }
  0x36   : > { %857 = dma.done.wait (%p1018_p2), %s281_s20, 128  }
  0x37   : > { %859 = vsyncadd (%p1018_p2), %s281_s20, 4294967168  ;;  %s290_s4 = sand.u32 1, %s961_s24   ;;  %s293_s26 = scalar_lea.vmem [#allocation5], %s1052_s1 }
  0x38   : > { %s291_s18 = scalar_lea.sflag [#allocation6], %s290_s4 }
  0x39   : > { %861 = dma.done.wait (%p1018_p2), %s291_s18, 32  }
  0x3a   : > { %863 = vsyncadd (%p1018_p2), %s291_s18, 4294967264  ;;  %s302_s29 = scalar_lea.vmem [#allocation7], %s1052_s1 }
  0x3b   : > { %865 = dma.done.wait (%p60_p13), [#allocation9], 256  }
  0x3c   : > { %867 = vsyncadd (%p60_p13), [#allocation9], 4294967040  ;;  %vm345_vm0 = vcmask 261120   ;;  %v344_v0 = vld [vmem:[%s284_s23] sm:$0xff]  ;;  %v899_v2 = vmov 32.0   ;;  %v590_v15 = vld [vmem:[#allocation8] sm:$0xff] }
  0x3d   : > { %v346_v1 = vsel %vm345_vm0, %v344_v0, 0.0  ;;  %680 = vrcp.f32 %v899_v2  ;;  %v591_v14 = vld [vmem:[#allocation8 + $0x8] sm:$0xff]  ;;  %s587_s24 = sshll.u32 %s886_s21, 3  ;;  %s1155_s28 = sld [smem:[#allocation24_spill]] }
  0x3e   : > { %347 = vadd.xlane.f32.xlu0 %v346_v1  ;;  %416 = vmatpush.bf16.msra.mxu0 %v591_v14  ;;  %v375_v22 = vld [vmem:[%s302_s29] sm:$0x1]  ;;  %s436_s9 = scalar_lea.hbm %s1128_s5, %s587_s24  ;;  %s342_s10 = scalar_lea.vmem [#allocation10], %s574_s3 }
  0x3f   : > { %v376_v24 = vadd.f32 1.0, %v375_v22  ;;  %v678_v30 = vld [vmem:[%s293_s26] ss:$0 sm:$0xff]  ;;  %s438_s11 = sshll.u32 %s342_s10, 4  ;;  %s440_s12 = sshll.u32 %s436_s9, 4  ;;  %s439_s11 = int_to_ptr.vmem [resolvable:$true] %s438_s11  ;;  %s441_s12 = int_to_ptr.hbm [resolvable:$true] %s440_s12 }
  0x40   : > { %s425_s13 = scalar_lea.sflag [#allocation4], %s1052_s1  ;;  %s818_s21 = sshra.s32 %s441_s12, 4  ;;  %s819_s21 = int_to_ptr.hbm [resolvable:$true] %s818_s21 }
  0x41   : > { %v378_v27 = vperm.slane %v376_v24, 0  ;;  %s820_s14 = scalar_lea.hbm %s819_s21, 8  ;;  %s824_s27 = scalar_lea.hbm %s1128_s5, 16 }
  0x42   : > { %417 = vmatpush.bf16.msra.mxu0 %v590_v15  ;;  %p821_p6 = scmp.ne.s32.totalorder %s819_s21, %s820_s14  ;;  %p825_p12 = scmp.lt.s32.totalorder %s819_s21, %s1128_s5 }
  0x43   : > { %v681_v3 = vpop.eup %680  ;;  %v679_v34 = vld [vmem:[%s1155_s28] ss:$0 sm:$0xff]  ;;  %p826_p13 = scmp.lt.s32.totalorder %s824_s27, %s820_s14 }
  0x44   : > { %v350_v4 = vmul.f32 32.0, %v681_v3  ;;  %vm354_vm1 = vweird.f32 %v681_v3  ;;  %p822_p7 = pnand %p821_p6, %p976_p8 }
  0x45   : > { %p827_p0 = por %p826_p13, %p825_p12 }
  0x46   : > { %v351_v5 = vsub.f32 1.0, %v350_v4  ;;  %p823_p11 = pneg %p822_p7 }
  0x48   : > { %v352_v6 = vmul.f32 %v681_v3, %v351_v5  ;;  %p828_p1 = pnand %p827_p0, %p823_p11 }
  0x4a   : > { %v353_v7 = vadd.f32 %v681_v3, %v352_v6 }
  0x4c   : > { %v355_v8 = vsel %vm354_vm1, %v681_v3, %v353_v7 }
  0xb1   : > { %v348_v9 = vpop.xlane.xlu0 %347 }
  0xb2   : > { %v356_v10 = vmul.f32 %v355_v8, %v348_v9 }
  0xb4   : > { %v357_v11 = vsub.f32 %v344_v0, %v356_v10 }
  0xb6   : > { %v358_v12 = vmul.f32 %v357_v11, %v357_v11 }
  0xb8   : > { %v359_v13 = vsel %vm345_vm0, %v358_v12, 0.0 }
  0xb9   : > { %360 = vadd.xlane.f32.xlu0 %v359_v13 }
 0x12c   : > { %v361_v16 = vpop.xlane.xlu0 %360 }
 0x12d   : > { %v362_v17 = vmul.f32 %v361_v16, %v355_v8 }
 0x12f   : > { %v363_v18 = vadd.f32 1e-06, %v362_v17 }
 0x131   : > { %682 = vrsqrt.f32 %v363_v18  ;;  %vm370_vm3 = vweird.f32 %v363_v18 }
 0x137   : > { %v683_v19 = vpop.eup %682 }
 0x138   : > { %v365_v20 = vmul.f32 %v683_v19, %v363_v18  ;;  %vm371_vm2 = vweird.f32 %v683_v19 }
 0x139   : > { %vm372_vm4 = vmor %vm370_vm3, %vm371_vm2 }
 0x13a   : > { %v366_v21 = vmul.f32 %v683_v19, %v365_v20 }
 0x13c   : > { %v367_v23 = vmul.f32 0.5, %v366_v21 }
 0x13e   : > { %v368_v25 = vsub.f32 1.5, %v367_v23 }
 0x140   : > { %v369_v26 = vmul.f32 %v683_v19, %v368_v25 }
 0x142   : > { %v373_v28 = vsel %vm372_vm4, %v683_v19, %v369_v26 }
 0x143   : > { %v374_v29 = vmul.f32 %v373_v28, %v357_v11 }
 0x145   : > { %v380_v31 = vmul.f32 %v378_v27, %v374_v29 }
 0x147   : > { %v385_v32 = vadd.f32 %v678_v30, %v380_v31 }
 0x149   : > { %v386_v33 = vpack.c.bf16 %v385_v32, %v385_v32 }
 0x14b   : > { %585 = vmatmul.msk.bf16.vlgmr.msra.gmra.mxu0 %vm345_vm0, %v386_v33 }
 0x1c8   : > { %v419_v35 = vpop.f32.mrf.mxu0 }
 0x1c9   : > { %v420_v36 = vadd.f32 %v679_v34, %v419_v35 }
 0x1cb   : > { %423 = vst [vmem:[%s342_s10] sm:$0xff] %v420_v36 }
 0x1cc   : > { %831 = shalt.err (!%p828_p1)
}
 0x1cd   : > { %602 = dma.vmem_to_hbm [thread:$0]  (%p976_p8), %s439_s11, 128, %s441_s12, %s425_s13  }
 0x1d0   : > { %v421_v37 = vpop.f32.mrf.mxu0 }
 0x1d1 PF: > { %s1156_s1 = sld [smem:[#allocation15_spill]]  ;;  %p619_p2 = pnand %p570_p10, %p983_p9 }
 0x1d2   : > { %s1158_s23 = sld [smem:[#allocation17_spill]] }
 0x1d3   : > { %p620_p4 = pneg %p619_p2 }
 0x1d7   : > { %s452_s4 = sand.u32 1, %s1156_s1  }
 0x1d8   : > { %s453_s18 = scalar_lea.sflag [#allocation4], %s452_s4 }
 0x1d9   : > { %869 = dma.done.wait (%p620_p4), %s453_s18, 128  }
 0x1da   : > { %871 = vsyncadd (%p620_p4), %s453_s18, 4294967168  ;;  %s25_s23 = sadd.s32 1, %s1158_s23   ;;  %s1159_s26 = sld [smem:[#allocation16_spill]] }
 0x1db   : > { %p22_p5 = scmp.ge.s32.totalorder %s25_s23, 4   ;;  %s1160_s20 = sld [smem:[#allocation21_spill]] }
 0x1dc   : > { %s1161_s29 = sld [smem:[#allocation18_spill]]  ;;  %s1162_s18 = smov %s878_s19 }
 0x1dd   : > { %s1164_s21 = smov %s890_s22 }
 0x1de   :  { %24 = sbr.rel (!%p22_p5) target bundleno = 13 (0xd), region = 113 }
 0x1e0   : > { %s1163_s19 = smov %s1159_s26 }
 0x1e2   : > { %s1165_s22 = smov %s1161_s29 }
 0x1e3   :  { %459 = vsyncpa [#allocation3], 1 }
 0x1e4   :  { %461 = vsyncpa [#allocation3 + $0x1], 1 }
 0x1e5   :  { %462 = vsyncpa [#allocation6], 1 }
 0x1e6   :  { %464 = vsyncpa [#allocation6 + $0x1], 1 }
 0x1e7   :  { %465 = vsyncpa [#allocation9], 1 }
 0x1e8   :  { %466 = vsyncpa [#allocation4], 1 }
 0x1e9   :  { %468 = vsyncpa [#allocation4 + $0x1], 1 }

</bundles_post_ra>
